<compile_context>
chip_gen: v5e
topology: v5e:2x2
jax: 0.10.0
libtpu: 0.0.40
codegen_flags: <defaults>
</compile_context>

<pallas_src>
import functools

import jax
import jax.numpy as jnp
from jax.experimental import pallas as pl
from jax.experimental.pallas import tpu as pltpu

IN_F = 53        # true input features
HID = 64         # hidden width
OUT_F = 6        # true number of actions
OUT_P = 8        # padded logits width (full-array last dim -> legal block)
NEG_INF = -1e30
TB_TARGET = 4096  # max batch tile rows (fits comfortably in scoped VMEM)


def _round_up(n, m):
    return ((n + m - 1) // m) * m


def _cdiv(a, b):
    return (a + b - 1) // b


def _supports_bf16_transcendentals():
    """bf16 VPU/EUP path exists on v6e/v7x; not on v5e and older."""
    try:
        kind = jax.devices()[0].device_kind.lower()
    except Exception:
        return False
    if "tpu" not in kind:
        return False
    for old in ("v2", "v3", "v4", "v5"):
        if old in kind:
            return False
    return True


def agent_mlp_kernel(x_ref, w1_ref, b1_ref, w2_ref, b2_ref, w3_ref, b3_ref,
                     o_ref, *, act_dtype):
    # x: (TB, 53) f32; weights bf16 (in, out); biases f32 (1, out); o: (TB, 8) f32
    xb = x_ref[...].astype(jnp.bfloat16)

    h1_pre = jnp.dot(xb, w1_ref[...], preferred_element_type=jnp.float32) + b1_ref[...]
    h1 = jnp.tanh(h1_pre.astype(act_dtype)).astype(jnp.bfloat16)

    h2_pre = jnp.dot(h1, w2_ref[...], preferred_element_type=jnp.float32) + b2_ref[...]
    h2 = jnp.tanh(h2_pre.astype(act_dtype)).astype(jnp.bfloat16)

    logits = jnp.dot(h2, w3_ref[...], preferred_element_type=jnp.float32) + b3_ref[...]

    # Numerically-stable softmax over the 8-lane (6 real + 2 padded) action dim;
    # padded columns carry a -1e30 bias so exp() -> 0 and don't perturb the denom.
    m = jnp.max(logits, axis=-1, keepdims=True)
    e = jnp.exp((logits - m).astype(act_dtype)).astype(jnp.float32)
    denom = jnp.sum(e, axis=-1, keepdims=True)
    r = pl.reciprocal(denom, approx=True)
    r = r * (2.0 - denom * r)  # one Newton step -> ~f32-accurate reciprocal
    o_ref[...] = (e * r).astype(o_ref.dtype)


def init_agent_params():
    """Matches layer_init: weight = 0, bias = 0.1 for all three Linear layers."""
    w1 = jnp.zeros((IN_F, HID), jnp.float32)
    b1 = jnp.full((HID,), 0.1, jnp.float32)
    w2 = jnp.zeros((HID, HID), jnp.float32)
    b2 = jnp.full((HID,), 0.1, jnp.float32)
    w3 = jnp.zeros((HID, OUT_F), jnp.float32)
    b3 = jnp.full((OUT_F,), 0.1, jnp.float32)
    return (w1, b1, w2, b2, w3, b3)


def agent_forward(x, params):
    """Forward pass of Agent. x: (B, 53) any float dtype -> (B, 6) f32 probs."""
    w1, b1, w2, b2, w3, b3 = params
    B = x.shape[0]
    x = x.astype(jnp.float32)  # matches x.float() in the module; stays f32 in HBM

    # Batch tile: multiple of 8 (sublane), capped at TB_TARGET, and chosen so the
    # grid has >=2 (even) steps when the batch allows -> both v7x TCs get work.
    if B >= 16:
        n_steps = max(2, _cdiv(B, TB_TARGET))
        if n_steps % 2:
            n_steps += 1
    else:
        n_steps = 1
    TB = min(TB_TARGET, _round_up(_cdiv(B, n_steps), 8))
    grid = (_cdiv(B, TB),)  # ragged tail block handled by Pallas masking

    act_dtype = jnp.bfloat16 if _supports_bf16_transcendentals() else jnp.float32

    # Tiny one-time param glue (negligible bytes): bf16 weights for single-pass
    # MXU, biases as (1, out) rows, logits padded 6 -> 8 lanes with -1e30 bias.
    w1b = w1.astype(jnp.bfloat16)
    w2b = w2.astype(jnp.bfloat16)
    w3b = (jnp.zeros((HID, OUT_P), jnp.float32).at[:, :OUT_F].set(w3)
           ).astype(jnp.bfloat16)
    b1r = b1.reshape(1, HID).astype(jnp.float32)
    b2r = b2.reshape(1, HID).astype(jnp.float32)
    b3r = jnp.full((1, OUT_P), NEG_INF, jnp.float32).at[:, :OUT_F].set(b3)

    param_bytes = (2 * (IN_F * HID + HID * HID + HID * OUT_P)
                   + 4 * (HID + HID + OUT_P))
    cost = pl.CostEstimate(
        flops=2 * B * (IN_F * HID + HID * HID + HID * OUT_P),
        transcendentals=B * (2 * HID + OUT_P),
        bytes_accessed=B * (IN_F + OUT_P) * 4 + param_bytes,
    )

    # Generous scoped-VMEM budget (lane-padded blocks, double-buffered, temps),
    # kept under v7x's 64 MiB physical; explicit so v5e's 16 MiB default doesn't
    # shrink buffering at large TB.
    vmem_limit = int(min(48 * 1024 * 1024, max(24 * 1024 * 1024, TB * 10 * 1024)))

    out = pl.pallas_call(
        functools.partial(agent_mlp_kernel, act_dtype=act_dtype),
        out_shape=jax.ShapeDtypeStruct((B, OUT_P), jnp.float32),
        grid=grid,
        in_specs=[
            pl.BlockSpec((TB, IN_F), lambda i: (i, 0)),     # x: tiled over batch
            pl.BlockSpec((IN_F, HID), lambda i: (0, 0)),    # w1 (bf16, VMEM-resident)
            pl.BlockSpec((1, HID), lambda i: (0, 0)),       # b1
            pl.BlockSpec((HID, HID), lambda i: (0, 0)),     # w2 (bf16)
            pl.BlockSpec((1, HID), lambda i: (0, 0)),       # b2
            pl.BlockSpec((HID, OUT_P), lambda i: (0, 0)),   # w3 (bf16, padded to 8)
            pl.BlockSpec((1, OUT_P), lambda i: (0, 0)),     # b3 (padded, -1e30 cols)
        ],
        out_specs=pl.BlockSpec((TB, OUT_P), lambda i: (i, 0)),
        compiler_params=pltpu.CompilerParams(
            dimension_semantics=("parallel",),
            vmem_limit_bytes=vmem_limit,
        ),
        cost_estimate=cost,
    )(x, w1b, b1r, w2b, b2r, w3b, b3r)

    return out[:, :OUT_F]


def agent_forward_ref(x, params):
    """Pure-JAX f32 reference (highest-precision matmuls) for correctness checking."""
    w1, b1, w2, b2, w3, b3 = params
    x = x.astype(jnp.float32)
    hp = jax.lax.Precision.HIGHEST
    h1 = jnp.tanh(jnp.dot(x, w1, precision=hp) + b1)
    h2 = jnp.tanh(jnp.dot(h1, w2, precision=hp) + b2)
    logits = jnp.dot(h2, w3, precision=hp) + b3
    return jax.nn.softmax(logits, axis=-1)


if __name__ == "__main__":
    key = jax.random.PRNGKey(0)
    B = 8
    kx, k1, k2, k3 = jax.random.split(key, 4)
    x = jax.random.normal(kx, (B, IN_F), dtype=jnp.float32)

    # 1) Module-faithful init (weights=0, bias=0.1) -> uniform 1/6 policy (exact
    #    regardless of bf16 compute, since all real logits are equal).
    params = init_agent_params()
    out = jax.block_until_ready(agent_forward(x, params))
    assert out.shape == (B, OUT_F)
    assert jnp.allclose(out, jnp.full((B, OUT_F), 1.0 / OUT_F), atol=1e-5)
    assert jnp.allclose(out, agent_forward_ref(x, params), atol=1e-5, rtol=1e-5)

    # 2) Random-weight check so the matmul / softmax path is actually exercised.
    #    Tolerance accounts for bf16 MXU inputs / bf16 transcendentals vs the
    #    HIGHEST-precision f32 reference (probabilities in [0,1]).
    rparams = (
        0.2 * jax.random.normal(k1, (IN_F, HID), jnp.float32),
        jnp.full((HID,), 0.1, jnp.float32),
        0.2 * jax.random.normal(k2, (HID, HID), jnp.float32),
        jnp.full((HID,), 0.1, jnp.float32),
        0.2 * jax.random.normal(k3, (HID, OUT_F), jnp.float32),
        jnp.full((OUT_F,), 0.1, jnp.float32),
    )
    out_r = jax.block_until_ready(agent_forward(x, rparams))
    ref_r = agent_forward_ref(x, rparams)
    assert out_r.shape == (B, OUT_F)
    assert jnp.allclose(out_r, ref_r, atol=3e-2, rtol=3e-2)
    assert jnp.allclose(out_r.sum(axis=-1), 1.0, atol=1e-4)

    print("KERNEL_OK")
</pallas_src>

<mosaic_0001>
module attributes {stable_mosaic.version = 11 : i64} {
  func.func @agent_mlp_kernel(%arg0: i32, %arg1: memref<8x53xf32, #tpu.memory_space<vmem>>, %arg2: memref<53x64xbf16, #tpu.memory_space<vmem>>, %arg3: memref<1x64xf32, #tpu.memory_space<vmem>>, %arg4: memref<64x64xbf16, #tpu.memory_space<vmem>>, %arg5: memref<1x64xf32, #tpu.memory_space<vmem>>, %arg6: memref<64x8xbf16, #tpu.memory_space<vmem>>, %arg7: memref<1x8xf32, #tpu.memory_space<vmem>>, %arg8: memref<8x8xf32, #tpu.memory_space<vmem>>) attributes {dimension_semantics = [#tpu.dimension_semantics<parallel>], iteration_bounds = array<i64: 1>, scalar_prefetch = 0 : i64, scratch_operands = 0 : i64, tpu.core_type = #tpu.core_type<tc>, window_params = [{transform_indices = @transform_0, window_bounds = array<i64: 8, 53>}, {pipeline_mode = #tpu.pipeline_mode<synchronous>, transform_indices = @transform_1, window_bounds = array<i64: 53, 64>}, {pipeline_mode = #tpu.pipeline_mode<synchronous>, transform_indices = @transform_2, window_bounds = array<i64: 1, 64>}, {pipeline_mode = #tpu.pipeline_mode<synchronous>, transform_indices = @transform_3, window_bounds = array<i64: 64, 64>}, {pipeline_mode = #tpu.pipeline_mode<synchronous>, transform_indices = @transform_4, window_bounds = array<i64: 1, 64>}, {pipeline_mode = #tpu.pipeline_mode<synchronous>, transform_indices = @transform_5, window_bounds = array<i64: 64, 8>}, {pipeline_mode = #tpu.pipeline_mode<synchronous>, transform_indices = @transform_6, window_bounds = array<i64: 1, 8>}, {transform_indices = @transform_7, window_bounds = array<i64: 8, 8>}]} {
    %c0 = arith.constant 0 : index
    %c0_0 = arith.constant 0 : index
    %0 = vector.load %arg1[%c0, %c0_0] : memref<8x53xf32, #tpu.memory_space<vmem>>, vector<8x53xf32>
    %1 = arith.truncf %0 : vector<8x53xf32> to vector<8x53xbf16>
    %c0_1 = arith.constant 0 : index
    %c0_2 = arith.constant 0 : index
    %2 = vector.load %arg2[%c0_1, %c0_2] : memref<53x64xbf16, #tpu.memory_space<vmem>>, vector<53x64xbf16>
    %cst = arith.constant dense<0.000000e+00> : vector<8x64xf32>
    %3 = tpu.matmul %1, %2, %cst {dimension_numbers = #tpu.dot_dimension_numbers<[1], [0], [0], [1], [0, 0, 1, 1], [], []>} : vector<8x53xbf16>, vector<53x64xbf16>, vector<8x64xf32> -> vector<8x64xf32>
    %c0_3 = arith.constant 0 : index
    %c0_4 = arith.constant 0 : index
    %4 = vector.load %arg3[%c0_3, %c0_4] : memref<1x64xf32, #tpu.memory_space<vmem>>, vector<1x64xf32>
    %5 = vector.broadcast %4 : vector<1x64xf32> to vector<8x64xf32>
    %6 = arith.addf %3, %5 : vector<8x64xf32>
    %7 = math.tanh %6 : vector<8x64xf32>
    %8 = arith.truncf %7 : vector<8x64xf32> to vector<8x64xbf16>
    %c0_5 = arith.constant 0 : index
    %c0_6 = arith.constant 0 : index
    %9 = vector.load %arg4[%c0_5, %c0_6] : memref<64x64xbf16, #tpu.memory_space<vmem>>, vector<64x64xbf16>
    %cst_7 = arith.constant dense<0.000000e+00> : vector<8x64xf32>
    %10 = tpu.matmul %8, %9, %cst_7 {dimension_numbers = #tpu.dot_dimension_numbers<[1], [0], [0], [1], [0, 0, 1, 1], [], []>} : vector<8x64xbf16>, vector<64x64xbf16>, vector<8x64xf32> -> vector<8x64xf32>
    %c0_8 = arith.constant 0 : index
    %c0_9 = arith.constant 0 : index
    %11 = vector.load %arg5[%c0_8, %c0_9] : memref<1x64xf32, #tpu.memory_space<vmem>>, vector<1x64xf32>
    %12 = vector.broadcast %11 : vector<1x64xf32> to vector<8x64xf32>
    %13 = arith.addf %10, %12 : vector<8x64xf32>
    %14 = math.tanh %13 : vector<8x64xf32>
    %15 = arith.truncf %14 : vector<8x64xf32> to vector<8x64xbf16>
    %c0_10 = arith.constant 0 : index
    %c0_11 = arith.constant 0 : index
    %16 = vector.load %arg6[%c0_10, %c0_11] : memref<64x8xbf16, #tpu.memory_space<vmem>>, vector<64x8xbf16>
    %cst_12 = arith.constant dense<0.000000e+00> : vector<8x8xf32>
    %17 = tpu.matmul %15, %16, %cst_12 {dimension_numbers = #tpu.dot_dimension_numbers<[1], [0], [0], [1], [0, 0, 1, 1], [], []>} : vector<8x64xbf16>, vector<64x8xbf16>, vector<8x8xf32> -> vector<8x8xf32>
    %c0_13 = arith.constant 0 : index
    %c0_14 = arith.constant 0 : index
    %18 = vector.load %arg7[%c0_13, %c0_14] : memref<1x8xf32, #tpu.memory_space<vmem>>, vector<1x8xf32>
    %19 = vector.broadcast %18 : vector<1x8xf32> to vector<8x8xf32>
    %20 = arith.addf %17, %19 : vector<8x8xf32>
    %cst_15 = arith.constant dense<0xFF800000> : vector<8xf32>
    %21 = vector.multi_reduction <maximumf>, %20, %cst_15 [1] : vector<8x8xf32> to vector<8xf32>
    %22 = vector.shape_cast %21 : vector<8xf32> to vector<8x1xf32>
    %23 = vector.broadcast %22 : vector<8x1xf32> to vector<8x8xf32>
    %24 = arith.subf %20, %23 : vector<8x8xf32>
    %25 = math.exp %24 : vector<8x8xf32>
    %cst_16 = arith.constant dense<0.000000e+00> : vector<8xf32>
    %26 = vector.multi_reduction <add>, %25, %cst_16 [1] : vector<8x8xf32> to vector<8xf32>
    %27 = vector.shape_cast %26 : vector<8xf32> to vector<8x1xf32>
    %28 = tpu.reciprocal %27 {approx = true} : vector<8x1xf32> -> vector<8x1xf32>
    %29 = arith.mulf %27, %28 : vector<8x1xf32>
    %cst_17 = arith.constant 2.000000e+00 : f32
    %30 = vector.broadcast %cst_17 : f32 to vector<8x1xf32>
    %31 = arith.subf %30, %29 : vector<8x1xf32>
    %32 = arith.mulf %28, %31 : vector<8x1xf32>
    %33 = vector.broadcast %32 : vector<8x1xf32> to vector<8x8xf32>
    %34 = arith.mulf %25, %33 : vector<8x8xf32>
    %c0_18 = arith.constant 0 : index
    %c0_19 = arith.constant 0 : index
    %35 = vector.load %arg8[%c0_18, %c0_19] : memref<8x8xf32, #tpu.memory_space<vmem>>, vector<8x8xf32>
    tpu.vector_store %arg8[%c0_18, %c0_19], %34 {strides = array<i32>} : memref<8x8xf32, #tpu.memory_space<vmem>>, vector<8x8xf32>,
    return
  }
  func.func @transform_0(%arg0: i32) -> (i32, i32) {
    %c0_i32 = arith.constant 0 : i32
    %c0_i32_0 = arith.constant 0 : i32
    return %arg0, %c0_i32 : i32, i32
  }
  func.func @transform_1(%arg0: i32) -> (i32, i32) {
    %c0_i32 = arith.constant 0 : i32
    %c0_i32_0 = arith.constant 0 : i32
    %c0_i32_1 = arith.constant 0 : i32
    return %c0_i32, %c0_i32_0 : i32, i32
  }
  func.func @transform_2(%arg0: i32) -> (i32, i32) {
    %c0_i32 = arith.constant 0 : i32
    %c0_i32_0 = arith.constant 0 : i32
    %c0_i32_1 = arith.constant 0 : i32
    return %c0_i32, %c0_i32_0 : i32, i32
  }
  func.func @transform_3(%arg0: i32) -> (i32, i32) {
    %c0_i32 = arith.constant 0 : i32
    %c0_i32_0 = arith.constant 0 : i32
    %c0_i32_1 = arith.constant 0 : i32
    return %c0_i32, %c0_i32_0 : i32, i32
  }
  func.func @transform_4(%arg0: i32) -> (i32, i32) {
    %c0_i32 = arith.constant 0 : i32
    %c0_i32_0 = arith.constant 0 : i32
    %c0_i32_1 = arith.constant 0 : i32
    return %c0_i32, %c0_i32_0 : i32, i32
  }
  func.func @transform_5(%arg0: i32) -> (i32, i32) {
    %c0_i32 = arith.constant 0 : i32
    %c0_i32_0 = arith.constant 0 : i32
    %c0_i32_1 = arith.constant 0 : i32
    return %c0_i32, %c0_i32_0 : i32, i32
  }
  func.func @transform_6(%arg0: i32) -> (i32, i32) {
    %c0_i32 = arith.constant 0 : i32
    %c0_i32_0 = arith.constant 0 : i32
    %c0_i32_1 = arith.constant 0 : i32
    return %c0_i32, %c0_i32_0 : i32, i32
  }
  func.func @transform_7(%arg0: i32) -> (i32, i32) {
    %c0_i32 = arith.constant 0 : i32
    %c0_i32_0 = arith.constant 0 : i32
    return %arg0, %c0_i32 : i32, i32
  }
}

</mosaic_0001>

<bundles_post_ra>
// kernel: tpu_custom_call.1
= control target key start
LH: loop header
LB: loop body
LE: loop exit
PB: predicated region body
PF: predicated region fallthrough
CT: control target
= control target key end

     0   :  { %12 = vsyncpa [#allocation3], 0  ;;  %s505_s0 = inlined_call_operand.hbm [shape: f32[8,53], index: 0, kind: input, shape index: {}]   ;;  %s506_s1 = inlined_call_operand.hbm [shape: bf16[53,64], index: 1, kind: input, shape index: {}]   ;;  %s507_s2 = inlined_call_operand.vmem [shape: f32[1,64], index: 2, kind: input, shape index: {}]   ;;  %s508_s3 = inlined_call_operand.vmem [shape: bf16[64,64], index: 3, kind: input, shape index: {}]   ;;  %s509_s4 = inlined_call_operand.vmem [shape: f32[1,64], index: 4, kind: input, shape index: {}]   ;;  %s510_s5 = inlined_call_operand.vmem [shape: bf16[64,8], index: 5, kind: input, shape index: {}]   ;;  %s511_s6 = inlined_call_operand.vmem [shape: f32[1,8], index: 6, kind: input, shape index: {}]   ;;  %s512_s7 = inlined_call_operand.hbm [shape: f32[8,8], index: 7, kind: output, shape index: {}]  }
   0x1   :  { %13 = vsyncpa [#allocation6], 0 }
   0x2   :  { %14 = vsyncpa [#allocation4], 0  ;;  %s20_s26 = sshll.u32 %s505_s0, 4  ;;  %s412_s27 = smov [#allocation2]   ;;  %s21_s26 = int_to_ptr.hbm [resolvable:$true] %s20_s26 }
   0x3   :  { %s22_s28 = sshll.u32 %s412_s27, 4  ;;  %s30_s8 = sshll.u32 %s506_s1, 4  ;;  %s23_s28 = int_to_ptr.vmem [resolvable:$true] %s22_s28  ;;  %s31_s8 = int_to_ptr.hbm [resolvable:$true] %s30_s8 }
   0x4   :  { %25 = dma.hbm_to_vmem [thread:$0]  %s21_s26, 128, %s23_s28, [#allocation3]  }
   0x5   :  { %s413_s9 = smov [#allocation5]   ;;  %s414_s11 = smov 64  }
   0x6   :  { %s32_s10 = sshll.u32 %s413_s9, 4  ;;  %s415_s12 = smov 4   ;;  %s33_s10 = int_to_ptr.vmem [resolvable:$true] %s32_s10 }
   0x7   :  { %38 = dma.hbm_to_vmem [thread:$0]  %s31_s8, 448, %s33_s10, [#allocation6], %s414_s11, %s414_s11, %s415_s12  }
   0x8   :  { %406 = dma.done.wait [#allocation3], 128  }
   0x9   :  { %407 = vsyncadd [#allocation3], 4294967168 }
   0xa   :  { %408 = dma.done.wait [#allocation6], 448  }
   0xb   :  { %409 = vsyncadd [#allocation6], 4294966848  ;;  %vm96_vm0 = vcmask 1041408   ;;  %vm97_vm1 = vcmask 1042432   ;;  %v416_v0 = vmov 65535   ;;  %v312_v4 = vld [vmem:[%s508_s3 + $0x18] sm:$0xff] }
   0xc   :  { %v98_v1 = vsel %vm96_vm0, 4294967295, %v416_v0  ;;  %v66_v2 = vld [vmem:[#allocation5 + $0x18] sm:$0x7]  ;;  %162 = vmatpush.bf16.msra.mxu1 %v312_v4  ;;  %v308_v8 = vld [vmem:[#allocation5 + $0x10] sm:$0xff]  ;;  %v307_v9 = vld [vmem:[#allocation5 + $0x8] sm:$0xff]  ;;  %vm92_vm2 = vcmask 433152  }
   0xd   :  { %v84_v3 = vunpack.c.l.b16 %v66_v2  ;;  %v99_v5 = vsel %vm97_vm1, %v98_v1, 0  ;;  %v306_v10 = vld [vmem:[#allocation5] sm:$0xff]  ;;  %v58_v11 = vld [vmem:[#allocation2] sm:$0xff]  ;;  %v311_v13 = vld [vmem:[%s508_s3 + $0x10] sm:$0xff]  ;;  %vm154_vm3 = vcmask 523264   ;;  %vm225_vm4 = vcmask 64512  }
   0xe   :  { %v59_v12 = vpack.c.bf16 %v58_v11, %v58_v11  ;;  %v310_v14 = vld [vmem:[%s508_s3 + $0x8] sm:$0xff]  ;;  %v309_v15 = vld [vmem:[%s508_s3] sm:$0xff]  ;;  %v316_v16 = vld [vmem:[%s510_s5 + $0x18] sm:$0xff]  ;;  %s248_s9 = sshll.u32 %s512_s7, 4  ;;  %s249_s9 = int_to_ptr.hbm [resolvable:$true] %s248_s9 }
   0xf   :  { %v88_v6 = vpack.c.b16 %v84_v3, %v84_v3  ;;  %216 = vmatpush.bf16.msra.mxu2 %v316_v16  ;;  %v323_v17 = vld [vmem:[%s507_s2] ss:$0 sm:$0xff]  ;;  %v315_v23 = vld [vmem:[%s510_s5 + $0x10] sm:$0xff]  ;;  %v314_v24 = vld [vmem:[%s510_s5 + $0x8] sm:$0xff] }
  0x10   :  { %163 = vmatpush.bf16.msra.mxu1 %v311_v13  ;;  %v313_v25 = vld [vmem:[%s510_s5] sm:$0xff] }
  0x11   :  { %v101_v7 = vand.u32 %v99_v5, %v88_v6  ;;  %v324_v26 = vld [vmem:[%s509_s4] ss:$0 sm:$0xff]  ;;  %s417_s4 = smov [#allocation7]  }
  0x12   :  { %v325_v32 = vld [vmem:[%s511_s6] ss:$0 sm:$0xff]  ;;  %s246_s5 = sshll.u32 %s417_s4, 4  ;;  %s247_s5 = int_to_ptr.vmem [resolvable:$true] %s246_s5 }
  0x13   :  { %107 = vmatpush.bf16.msra.mxu0 %v101_v7  ;;  %217 = vmatpush.bf16.msra.mxu2 %v315_v23 }
  0x14   :  { %164 = vmatpush.bf16.msra.mxu1 %v310_v14 }
  0x17   :  { %108 = vmatpush.bf16.msra.mxu0 %v308_v8  ;;  %218 = vmatpush.bf16.msra.mxu2 %v314_v24 }
  0x18   :  { %165 = vmatpush.bf16.msra.mxu1 %v309_v15 }
  0x1b   :  { %109 = vmatpush.bf16.msra.mxu0 %v307_v9  ;;  %219 = vmatpush.bf16.msra.mxu2 %v313_v25 }
  0x1f   :  { %110 = vmatpush.bf16.msra.mxu0 %v306_v10 }
  0x22   :  { %271 = vmatmul.msk.bf16.vlgmr.msra.gmra.mxu0 %vm92_vm2, %v59_v12 }
  0x9f   :  { %v112_v18 = vpop.f32.mrf.mxu0 }
  0xa0   :  { %v113_v19 = vadd.f32 %v323_v17, %v112_v18 }
  0xa2   :  { %326 = vtanh.f32 %v113_v19 }
  0xa7   :  { %v114_v20 = vpop.f32.mrf.mxu0 }
  0xa8   :  { %v327_v21 = vpop.eup %326 }
  0xa9   :  { %v117_v22 = vpack.c.bf16 %v327_v21, %v327_v21 }
  0xab   :  { %288 = vmatmul.msk.bf16.vlgmr.msra.gmra.mxu1 %vm154_vm3, %v117_v22 }
 0x128   :  { %v167_v27 = vpop.f32.mrf.mxu1 }
 0x129   :  { %v168_v28 = vadd.f32 %v324_v26, %v167_v27 }
 0x12b   :  { %328 = vtanh.f32 %v168_v28 }
 0x130   :  { %v169_v29 = vpop.f32.mrf.mxu1 }
 0x131   :  { %v329_v30 = vpop.eup %328 }
 0x132   :  { %v172_v31 = vpack.c.bf16 %v329_v30, %v329_v30 }
 0x134   :  { %305 = vmatmul.msk.bf16.vlgmr.msra.gmra.mxu2 %vm154_vm3, %v172_v31 }
 0x1b7   :  { %v221_v33 = vpop.f32.mrf.mxu2 }
 0x1b8   :  { %v222_v34 = vadd.f32 %v325_v32, %v221_v33 }
 0x1ba   :  { %v226_v35 = vsel %vm225_vm4, %v222_v34, -inf }
 0x1bb   :  { %227 = vmax.xlane.f32.xlu0 %v226_v35 }
 0x1bf   :  { %v223_v36 = vpop.f32.mrf.mxu2 }
 0x22e   :  { %v228_v37 = vpop.xlane.xlu0 %227 }
 0x22f   :  { %v229_v38 = vsub.f32 %v222_v34, %v228_v37 }
 0x231   :  { %v230_v39 = vmul.f32 1.442695, %v229_v38 }
 0x233   :  { %330 = vpow2.f32 %v230_v39 }
 0x239   :  { %v331_v40 = vpop.eup %330 }
 0x23a   :  { %v232_v41 = vsel %vm225_vm4, %v331_v40, 0.0 }
 0x23b   :  { %233 = vadd.xlane.f32.xlu0 %v232_v41 }
 0x2ae   :  { %v234_v42 = vpop.xlane.xlu0 %233 }
 0x2af   :  { %332 = vrcp.f32 %v234_v42 }
 0x2b5   :  { %v333_v43 = vpop.eup %332 }
 0x2b6   :  { %v236_v44 = vmul.f32 %v333_v43, %v234_v42 }
 0x2b8   :  { %v237_v45 = vsub.f32 2.0, %v236_v44 }
 0x2ba   :  { %v238_v46 = vmul.f32 %v333_v43, %v237_v45 }
 0x2bc   :  { %v239_v47 = vmul.f32 %v331_v40, %v238_v46 }
 0x2be   :  { %240 = vst.msk [vmem:[#allocation7] sm:$0xff] %vm225_vm4, %v239_v47 }
 0x2bf   :  { %251 = dma.vmem_to_hbm [thread:$0]  %s247_s5, 128, %s249_s9, [#allocation4]  }
 0x2c0   :  { %410 = dma.done.wait [#allocation4], 128  }
 0x2c1   :  { %411 = vsyncadd [#allocation4], 4294967168 }
 0x2c2   :  { %256 = vsyncpa [#allocation3], 1 }
 0x2c3   :  { %257 = vsyncpa [#allocation6], 1 }
 0x2c4   :  { %258 = vsyncpa [#allocation4], 1 }

</bundles_post_ra>
